<compile_context>
chip_gen: v7x
topology: tpu7x:2x2x1
jax: 0.10.0
libtpu: 0.0.40
codegen_flags: <defaults>
</compile_context>

<pallas_src>
import jax
import jax.numpy as jnp
from jax.experimental import pallas as pl
from jax.experimental.pallas import tpu as pltpu


def net_j_kernel(x_ref, ct_ref, s2_ref, c2_ref, w2t_ref, out_ref):
    # x_ref:   (TB, Din)   input tile
    # ct_ref:  (Din, H)    RBF centres, transposed (lane-dense H for the MXU)
    # s2_ref:  (1, H)      sigmas^2 (precomputed)
    # c2_ref:  (1, H)      ||centres||^2 (precomputed)
    # w2t_ref: (H, Dout)   fc2 weight, column-permuted + transposed
    # out_ref: (TB, Dout)
    x = x_ref[...]                                                     # (TB, Din)

    # MXU: cross term of the squared distance
    xc = jnp.dot(x, ct_ref[...], preferred_element_type=jnp.float32)  # (TB, H)

    # VPU: ||x||^2 per row (tiny reduce over Din)
    x2 = jnp.sum(x * x, axis=-1, keepdims=True)                        # (TB, 1)

    # d2 = ||x||^2 - 2 x.c + ||c||^2  (clamp: cancellation can go slightly < 0)
    d2 = jnp.maximum(x2 - 2.0 * xc + c2_ref[...], 0.0)                 # (TB, H)

    # Gaussian basis without the redundant sqrt->square round trip (EUP exp)
    phi = jnp.exp(-d2 * s2_ref[...])                                   # (TB, H)

    # fc2 on the MXU
    out_ref[...] = jnp.dot(
        phi, w2t_ref[...], preferred_element_type=jnp.float32
    ).astype(out_ref.dtype)


def net_j_forward(x, centres, sigmas, w2, nFPs):
    """x: (B, 2*nFPs*3) f32. Returns (B, 3*nFPs, 12), matching Net_J.forward."""
    B, Din = x.shape
    H = centres.shape[0]
    Dout = w2.shape[0]                  # nFPs * 3 * 12
    assert Dout == nFPs * 3 * 12

    # --- host-side parameter prep (done once per set of weights) ---------------
    # Fold the (nFPs,12,3)->(nFPs,3,12) output transpose into the weight rows so
    # the kernel's flat (B, Dout) output is already in final layout.
    w2_perm = w2.reshape(nFPs, 12, 3, H).transpose(0, 2, 1, 3).reshape(Dout, H)
    w2t = w2_perm.T                                    # (H, Dout), lane-dense Dout
    ct = centres.T                                     # (Din, H),  lane-dense H
    s2 = (sigmas * sigmas).reshape(1, H)               # sigma^2
    c2 = jnp.sum(centres * centres, axis=-1).reshape(1, H)

    # --- batch tiling -----------------------------------------------------------
    if B <= 128:
        TB = B                                          # single block (full-dim block is legal)
        B_pad = B
        xp = x
    else:
        TB = 128                                        # MXU-aligned M tile, fits v5e/v6e/v7x
        B_pad = TB * pl.cdiv(B, TB)
        xp = jnp.pad(x, ((0, B_pad - B), (0, 0))) if B_pad != B else x

    grid = (B_pad // TB,)

    y = pl.pallas_call(
        net_j_kernel,
        out_shape=jax.ShapeDtypeStruct((B_pad, Dout), x.dtype),
        grid_spec=pltpu.PrefetchScalarGridSpec(
            num_scalar_prefetch=0,
            grid=grid,
            in_specs=[
                pl.BlockSpec((TB, Din), lambda i: (i, 0)),   # x tile (pipelined)
                pl.BlockSpec((Din, H), lambda i: (0, 0)),    # centres^T (resident)
                pl.BlockSpec((1, H), lambda i: (0, 0)),      # sigma^2  (resident)
                pl.BlockSpec((1, H), lambda i: (0, 0)),      # ||c||^2  (resident)
                pl.BlockSpec((H, Dout), lambda i: (0, 0)),   # w2^T     (resident)
            ],
            out_specs=pl.BlockSpec((TB, Dout), lambda i: (i, 0)),
        ),
        compiler_params=pltpu.CompilerParams(
            dimension_semantics=("parallel",),               # megacore shard over batch
        ),
    )(xp, ct, s2, c2, w2t)

    if B_pad != B:
        y = y[:B]
    # Weight permutation already applied -> pure reshape, no transpose copy.
    return y.reshape(B, 3 * nFPs, 12)


def _reference(x, centres, sigmas, w2, nFPs):
    # pure-JAX reference of the original (exact) math, for a sanity check
    diff = x[:, None, :] - centres[None, :, :]
    alpha = jnp.sqrt(jnp.sum(diff * diff, axis=-1)) * sigmas[None, :]
    phi = jnp.exp(-(alpha ** 2))
    y = phi @ w2.T
    B = x.shape[0]
    return y.reshape(B, nFPs, 12, 3).transpose(0, 1, 3, 2).reshape(B, 3 * nFPs, 12)


if __name__ == "__main__":
    nFPs = 8
    numHidden = 256
    Din = 2 * nFPs * 3          # 48
    Dout = nFPs * 3 * 12        # 288
    B = 2

    key = jax.random.PRNGKey(0)
    kx, kc, ks, kw = jax.random.split(key, 4)

    # Deterministic synthetic parameters (shapes from Net_J.__init__)
    x = jax.random.normal(kx, (B, Din), dtype=jnp.float32)
    centres = jax.random.normal(kc, (numHidden, Din), dtype=jnp.float32)      # rbf.RBF.centres
    # small inverse-sigmas so the gaussian basis is non-degenerate at these scales
    sigmas = jax.random.uniform(ks, (numHidden,), dtype=jnp.float32,
                                minval=0.05, maxval=0.3)                      # rbf.RBF.sigmas
    w2 = (jax.random.normal(kw, (Dout, numHidden), dtype=jnp.float32)
          * (1.0 / jnp.sqrt(numHidden)))                                      # fc2.weight

    out = net_j_forward(x, centres, sigmas, w2, nFPs)
    out = jax.block_until_ready(out)

    ref = _reference(x, centres, sigmas, w2, nFPs)
    assert out.shape == (B, 3 * nFPs, 12), out.shape
    assert jnp.allclose(out, ref, atol=1e-4, rtol=1e-4)

    print("KERNEL_OK")
</pallas_src>

<mosaic_0001>
module attributes {stable_mosaic.version = 11 : i64} {
  func.func @net_j_kernel(%arg0: i32, %arg1: memref<2x48xf32, #tpu.memory_space<vmem>>, %arg2: memref<48x256xf32, #tpu.memory_space<vmem>>, %arg3: memref<1x256xf32, #tpu.memory_space<vmem>>, %arg4: memref<1x256xf32, #tpu.memory_space<vmem>>, %arg5: memref<256x288xf32, #tpu.memory_space<vmem>>, %arg6: memref<2x288xf32, #tpu.memory_space<vmem>>) attributes {dimension_semantics = [#tpu.dimension_semantics<parallel>], iteration_bounds = array<i64: 1>, scalar_prefetch = 0 : i64, scratch_operands = 0 : i64, tpu.core_type = #tpu.core_type<tc>, window_params = [{transform_indices = @transform_0, window_bounds = array<i64: 2, 48>}, {pipeline_mode = #tpu.pipeline_mode<synchronous>, transform_indices = @transform_1, window_bounds = array<i64: 48, 256>}, {pipeline_mode = #tpu.pipeline_mode<synchronous>, transform_indices = @transform_2, window_bounds = array<i64: 1, 256>}, {pipeline_mode = #tpu.pipeline_mode<synchronous>, transform_indices = @transform_3, window_bounds = array<i64: 1, 256>}, {pipeline_mode = #tpu.pipeline_mode<synchronous>, transform_indices = @transform_4, window_bounds = array<i64: 256, 288>}, {transform_indices = @transform_5, window_bounds = array<i64: 2, 288>}]} {
    %c0 = arith.constant 0 : index
    %c0_0 = arith.constant 0 : index
    %0 = vector.load %arg1[%c0, %c0_0] : memref<2x48xf32, #tpu.memory_space<vmem>>, vector<2x48xf32>
    %c0_1 = arith.constant 0 : index
    %c0_2 = arith.constant 0 : index
    %1 = vector.load %arg2[%c0_1, %c0_2] : memref<48x256xf32, #tpu.memory_space<vmem>>, vector<48x256xf32>
    %cst = arith.constant dense<0.000000e+00> : vector<2x256xf32>
    %2 = tpu.matmul %0, %1, %cst {dimension_numbers = #tpu.dot_dimension_numbers<[1], [0], [0], [1], [0, 0, 1, 1], [], []>} : vector<2x48xf32>, vector<48x256xf32>, vector<2x256xf32> -> vector<2x256xf32>
    %3 = arith.mulf %0, %0 : vector<2x48xf32>
    %cst_3 = arith.constant dense<0.000000e+00> : vector<2xf32>
    %4 = vector.multi_reduction <add>, %3, %cst_3 [1] : vector<2x48xf32> to vector<2xf32>
    %5 = vector.shape_cast %4 : vector<2xf32> to vector<2x1xf32>
    %cst_4 = arith.constant 2.000000e+00 : f32
    %6 = vector.broadcast %cst_4 : f32 to vector<2x256xf32>
    %7 = arith.mulf %6, %2 : vector<2x256xf32>
    %8 = vector.broadcast %5 : vector<2x1xf32> to vector<2x256xf32>
    %9 = arith.subf %8, %7 : vector<2x256xf32>
    %c0_5 = arith.constant 0 : index
    %c0_6 = arith.constant 0 : index
    %10 = vector.load %arg4[%c0_5, %c0_6] : memref<1x256xf32, #tpu.memory_space<vmem>>, vector<1x256xf32>
    %11 = vector.broadcast %10 : vector<1x256xf32> to vector<2x256xf32>
    %12 = arith.addf %9, %11 : vector<2x256xf32>
    %cst_7 = arith.constant 0.000000e+00 : f32
    %13 = vector.broadcast %cst_7 : f32 to vector<2x256xf32>
    %14 = arith.maximumf %12, %13 : vector<2x256xf32>
    %cst_8 = arith.constant 0.000000e+00 : f32
    %15 = vector.broadcast %cst_8 : f32 to vector<2x256xf32>
    %16 = arith.subf %15, %14 : vector<2x256xf32>
    %c0_9 = arith.constant 0 : index
    %c0_10 = arith.constant 0 : index
    %17 = vector.load %arg3[%c0_9, %c0_10] : memref<1x256xf32, #tpu.memory_space<vmem>>, vector<1x256xf32>
    %18 = vector.broadcast %17 : vector<1x256xf32> to vector<2x256xf32>
    %19 = arith.mulf %16, %18 : vector<2x256xf32>
    %20 = math.exp %19 : vector<2x256xf32>
    %c0_11 = arith.constant 0 : index
    %c0_12 = arith.constant 0 : index
    %21 = vector.load %arg5[%c0_11, %c0_12] : memref<256x288xf32, #tpu.memory_space<vmem>>, vector<256x288xf32>
    %cst_13 = arith.constant dense<0.000000e+00> : vector<2x288xf32>
    %22 = tpu.matmul %20, %21, %cst_13 {dimension_numbers = #tpu.dot_dimension_numbers<[1], [0], [0], [1], [0, 0, 1, 1], [], []>} : vector<2x256xf32>, vector<256x288xf32>, vector<2x288xf32> -> vector<2x288xf32>
    %c0_14 = arith.constant 0 : index
    %c0_15 = arith.constant 0 : index
    %23 = vector.load %arg6[%c0_14, %c0_15] : memref<2x288xf32, #tpu.memory_space<vmem>>, vector<2x288xf32>
    tpu.vector_store %arg6[%c0_14, %c0_15], %22 {strides = array<i32>} : memref<2x288xf32, #tpu.memory_space<vmem>>, vector<2x288xf32>,
    return
  }
  func.func @transform_0(%arg0: i32) -> (i32, i32) {
    %c0_i32 = arith.constant 0 : i32
    %c0_i32_0 = arith.constant 0 : i32
    return %arg0, %c0_i32 : i32, i32
  }
  func.func @transform_1(%arg0: i32) -> (i32, i32) {
    %c0_i32 = arith.constant 0 : i32
    %c0_i32_0 = arith.constant 0 : i32
    %c0_i32_1 = arith.constant 0 : i32
    return %c0_i32, %c0_i32_0 : i32, i32
  }
  func.func @transform_2(%arg0: i32) -> (i32, i32) {
    %c0_i32 = arith.constant 0 : i32
    %c0_i32_0 = arith.constant 0 : i32
    %c0_i32_1 = arith.constant 0 : i32
    return %c0_i32, %c0_i32_0 : i32, i32
  }
  func.func @transform_3(%arg0: i32) -> (i32, i32) {
    %c0_i32 = arith.constant 0 : i32
    %c0_i32_0 = arith.constant 0 : i32
    %c0_i32_1 = arith.constant 0 : i32
    return %c0_i32, %c0_i32_0 : i32, i32
  }
  func.func @transform_4(%arg0: i32) -> (i32, i32) {
    %c0_i32 = arith.constant 0 : i32
    %c0_i32_0 = arith.constant 0 : i32
    %c0_i32_1 = arith.constant 0 : i32
    return %c0_i32, %c0_i32_0 : i32, i32
  }
  func.func @transform_5(%arg0: i32) -> (i32, i32) {
    %c0_i32 = arith.constant 0 : i32
    %c0_i32_0 = arith.constant 0 : i32
    return %arg0, %c0_i32 : i32, i32
  }
}

</mosaic_0001>

<bundles_post_ra>
// kernel: tpu_custom_call.1
= control target key start
LH: loop header
LB: loop body
LE: loop exit
PB: predicated region body
PF: predicated region fallthrough
CT: control target
= control target key end

     0   :  { %v606_v7 = vmov 0.0   ;;  %vm110_vm0 = vcmask 386048   ;;  %vm34_vm1 = vcmask 392192   ;;  %s984_s0 = inlined_call_operand.vmem [shape: f32[2,48], index: 0, kind: input, shape index: {}]   ;;  %s985_s1 = inlined_call_operand.vmem [shape: f32[48,256], index: 1, kind: input, shape index: {}]   ;;  %s986_s2 = inlined_call_operand.vmem [shape: f32[1,256], index: 2, kind: input, shape index: {}]   ;;  %s987_s3 = inlined_call_operand.vmem [shape: f32[1,256], index: 3, kind: input, shape index: {}]   ;;  %s988_s4 = inlined_call_operand.vmem [shape: f32[256,288], index: 4, kind: input, shape index: {}]   ;;  %s989_s5 = inlined_call_operand.hbm [shape: f32[2,288], index: 5, kind: output, shape index: {}]  }
   0x1   :  { %v23_v0 = vld [vmem:[%s985_s1 + $0x8] sm:$0xff]  ;;  %v25_v1 = vld [vmem:[%s985_s1 + $0x18] sm:$0xff]  ;;  %v22_v2 = vld [vmem:[%s985_s1] sm:$0xff]  ;;  %102 = vmatprep.mubr.f32.mxu0 %v606_v7 }
   0x2   :  { %v467_v3 = vpack.c.bf16 %v25_v1, %v23_v0  ;;  %v24_v4 = vld [vmem:[%s985_s1 + $0x10] sm:$0xff]  ;;  %v27_v5 = vld [vmem:[%s985_s1 + $0x28] sm:$0xff]  ;;  %v29_v6 = vld [vmem:[%s985_s1 + $0x38] sm:$0xff] }
   0x3   :  { %v469_v8 = vpack.c.bf16 %v24_v4, %v22_v2  ;;  %v471_v9 = vpack.c.bf16 %v29_v6, %v27_v5  ;;  %v26_v10 = vld [vmem:[%s985_s1 + $0x20] sm:$0xff]  ;;  %v28_v11 = vld [vmem:[%s985_s1 + $0x30] sm:$0xff]  ;;  %v31_v12 = vld [vmem:[%s985_s1 + $0x48] sm:$0xff] }
   0x4   :  { %468 = vmatprep.subr.bf16.mxu0 %v467_v3  ;;  %v33_v13 = vld [vmem:[%s985_s1 + $0x58] sm:$0xff]  ;;  %v30_v14 = vld [vmem:[%s985_s1 + $0x40] sm:$0xff]  ;;  %v32_v15 = vld [vmem:[%s985_s1 + $0x50] sm:$0xff]  ;;  %v473_v16 = vpack.c.bf16 %v28_v11, %v26_v10 }
   0x5   :  { %470 = vmatpush1.bf16.msra.mxu0 %v469_v8  ;;  %v21_v17 = vld [vmem:[%s984_s0] sm:$0x3]  ;;  %v155_v18 = vld [vmem:[%s988_s4 + $0x8] sm:$0xff]  ;;  %v475_v20 = vpack.c.bf16 %v33_v13, %v31_v12  ;;  %v157_v24 = vld [vmem:[%s988_s4 + $0x18] sm:$0xff]  ;;  %v477_v34 = vpack.c.bf16 %v32_v15, %v30_v14 }
   0x6   :  { %v158_v19 = vld [vmem:[%s988_s4 + $0x20] sm:$0xff]  ;;  %472 = vmatprep.subr.bf16.mxu0 %v471_v9  ;;  %v109_v21 = vmul.f32 %v21_v17, %v21_v17  ;;  %v161_v25 = vld [vmem:[%s988_s4 + $0x38] sm:$0xff]  ;;  %v164_v27 = vld [vmem:[%s988_s4 + $0x50] sm:$0xff] }
   0x7   :  { %v479_v22 = vpack.c.bf16 %v158_v19, %v155_v18  ;;  %v154_v23 = vld [vmem:[%s988_s4] sm:$0xff]  ;;  %v160_v28 = vld [vmem:[%s988_s4 + $0x30] sm:$0xff]  ;;  %v163_v29 = vld [vmem:[%s988_s4 + $0x48] sm:$0xff]  ;;  %v483_v31 = vpack.c.bf16 %v164_v27, %v161_v25 }
   0x8   :  { %v481_v26 = vpack.c.bf16 %v157_v24, %v154_v23  ;;  %v111_v30 = vsel %vm110_vm0, %v109_v21, 0.0  ;;  %v167_v32 = vld [vmem:[%s988_s4 + $0x68] sm:$0xff]  ;;  %v170_v33 = vld [vmem:[%s988_s4 + $0x80] sm:$0xff]  ;;  %v485_v35 = vpack.c.bf16 %v163_v29, %v160_v28  ;;  %v169_v38 = vld [vmem:[%s988_s4 + $0x78] sm:$0xff] }
   0x9   :  { %480 = vmatprep.subr.bf16.mxu1 %v479_v22  ;;  %474 = vmatpush1.bf16.msra.mxu0 %v473_v16  ;;  %v487_v36 = vpack.c.bf16 %v170_v33, %v167_v32  ;;  %v166_v37 = vld [vmem:[%s988_s4 + $0x60] sm:$0xff]  ;;  %v173_v39 = vld [vmem:[%s988_s4 + $0x98] sm:$0xff]  ;;  %v176_v40 = vld [vmem:[%s988_s4 + $0xb0] sm:$0xff] }
   0xa   :  { %112 = vadd.xlane.f32.xlu0 %v111_v30  ;;  %476 = vmatprep.subr.bf16.mxu0 %v475_v20  ;;  %v489_v41 = vpack.c.bf16 %v169_v38, %v166_v37  ;;  %v491_v42 = vpack.c.bf16 %v176_v40, %v173_v39  ;;  %v172_v43 = vld [vmem:[%s988_s4 + $0x90] sm:$0xff]  ;;  %v175_v44 = vld [vmem:[%s988_s4 + $0xa8] sm:$0xff]  ;;  %v182_v46 = vld [vmem:[%s988_s4 + $0xe0] sm:$0xff] }
   0xb   :  { %482 = vmatpush1.bf16.msra.mxu1 %v481_v26  ;;  %v179_v45 = vld [vmem:[%s988_s4 + $0xc8] sm:$0xff]  ;;  %v204_v47 = vld [vmem:[%s988_s4 + $0x190] sm:$0xff]  ;;  %v493_v49 = vpack.c.bf16 %v175_v44, %v172_v43 }
   0xc   :  { %484 = vmatprep.subr.bf16.mxu1 %v483_v31  ;;  %v207_v48 = vld [vmem:[%s988_s4 + $0x1a8] sm:$0xff]  ;;  %v156_v51 = vld [vmem:[%s988_s4 + $0x10] sm:$0xff] }
   0xd   :  { %478 = vmatpush1.bf16.msra.mxu0 %v477_v34  ;;  %v543_v50 = vpack.c.bf16 %v207_v48, %v204_v47  ;;  %v159_v52 = vld [vmem:[%s988_s4 + $0x28] sm:$0xff] }
   0xf   :  { %486 = vmatpush1.bf16.msra.mxu1 %v485_v35 }
  0x10   :  { %488 = vmatprep.subr.bf16.mxu1 %v487_v36  ;;  %431 = vmatmul.mubr.msk.f32.vlgmr.msra.gmra.mrb[0].mxu0 %vm34_vm1, %v21_v17 }
  0x13   :  { %490 = vmatpush1.bf16.msra.mxu1 %v489_v41 }
  0x14   :  { %10 = vsyncpa [#allocation3], 0  ;;  %492 = vmatprep.subr.bf16.mxu1 %v491_v42  ;;  %v495_v53 = vpack.c.bf16 %v182_v46, %v179_v45  ;;  %v178_v54 = vld [vmem:[%s988_s4 + $0xc0] sm:$0xff]  ;;  %v181_v55 = vld [vmem:[%s988_s4 + $0xd8] sm:$0xff]  ;;  %v545_v56 = vpack.c.bf16 %v159_v52, %v156_v51  ;;  %544 = vmatprep.subr.bf16.mxu0 %v543_v50  ;;  %vm411_vm2 = vcmask 1041408   ;;  %vm412_vm3 = vcmask 1043458  }
  0x15   :  { %v185_v57 = vld [vmem:[%s988_s4 + $0xf8] sm:$0xff]  ;;  %v188_v58 = vld [vmem:[%s988_s4 + $0x110] sm:$0xff]  ;;  %v497_v59 = vpack.c.bf16 %v181_v55, %v178_v54  ;;  %v187_v62 = vld [vmem:[%s988_s4 + $0x108] sm:$0xff]  ;;  %vm414_vm5 = vcmask 259076  }
  0x16   :  { %546 = vmatpush3.bf16.msra.mxu0 %v545_v56  ;;  %v499_v60 = vpack.c.bf16 %v188_v58, %v185_v57  ;;  %v184_v61 = vld [vmem:[%s988_s4 + $0xf0] sm:$0xff]  ;;  %v191_v63 = vld [vmem:[%s988_s4 + $0x128] sm:$0xff]  ;;  %v194_v0 = vld [vmem:[%s988_s4 + $0x140] sm:$0xff] }
  0x17   :  { %494 = vmatpush1.bf16.msra.mxu1 %v493_v49  ;;  %v501_v1 = vpack.c.bf16 %v187_v62, %v184_v61  ;;  %v503_v2 = vpack.c.bf16 %v194_v0, %v191_v63  ;;  %v190_v3 = vld [vmem:[%s988_s4 + $0x120] sm:$0xff]  ;;  %v193_v4 = vld [vmem:[%s988_s4 + $0x138] sm:$0xff]  ;;  %v200_v6 = vld [vmem:[%s988_s4 + $0x170] sm:$0xff] }
  0x18   :  { %496 = vmatprep.subr.bf16.mxu1 %v495_v53  ;;  %v197_v5 = vld [vmem:[%s988_s4 + $0x158] sm:$0xff]  ;;  %v505_v7 = vpack.c.bf16 %v193_v4, %v190_v3  ;;  %v196_v9 = vld [vmem:[%s988_s4 + $0x150] sm:$0xff]  ;;  %v199_v10 = vld [vmem:[%s988_s4 + $0x168] sm:$0xff] }
  0x19   :  { %v507_v8 = vpack.c.bf16 %v200_v6, %v197_v5  ;;  %v203_v11 = vld [vmem:[%s988_s4 + $0x188] sm:$0xff]  ;;  %v206_v12 = vld [vmem:[%s988_s4 + $0x1a0] sm:$0xff]  ;;  %v509_v13 = vpack.c.bf16 %v199_v10, %v196_v9  ;;  %v205_v16 = vld [vmem:[%s988_s4 + $0x198] sm:$0xff] }
  0x1a   :  { %v511_v14 = vpack.c.bf16 %v206_v12, %v203_v11  ;;  %v202_v15 = vld [vmem:[%s988_s4 + $0x180] sm:$0xff]  ;;  %v209_v18 = vld [vmem:[%s988_s4 + $0x1b8] sm:$0xff]  ;;  %v212_v19 = vld [vmem:[%s988_s4 + $0x1d0] sm:$0xff] }
  0x1b   :  { %498 = vmatpush1.bf16.msra.mxu1 %v497_v59  ;;  %v513_v17 = vpack.c.bf16 %v205_v16, %v202_v15  ;;  %v210_v20 = vld [vmem:[%s988_s4 + $0x1c0] sm:$0xff]  ;;  %v515_v21 = vpack.c.bf16 %v212_v19, %v209_v18  ;;  %v213_v22 = vld [vmem:[%s988_s4 + $0x1d8] sm:$0xff]  ;;  %v208_v23 = vld [vmem:[%s988_s4 + $0x1b0] sm:$0xff] }
  0x1c   :  { %500 = vmatprep.subr.bf16.mxu1 %v499_v60  ;;  %v211_v24 = vld [vmem:[%s988_s4 + $0x1c8] sm:$0xff]  ;;  %v547_v25 = vpack.c.bf16 %v213_v22, %v210_v20  ;;  %v162_v27 = vld [vmem:[%s988_s4 + $0x40] sm:$0xff]  ;;  %v165_v28 = vld [vmem:[%s988_s4 + $0x58] sm:$0xff] }
  0x1d   :  { %v517_v26 = vpack.c.bf16 %v211_v24, %v208_v23  ;;  %v549_v29 = vpack.c.bf16 %v165_v28, %v162_v27  ;;  %v215_v30 = vld [vmem:[%s988_s4 + $0x1e8] sm:$0xff]  ;;  %v218_v31 = vld [vmem:[%s988_s4 + $0x200] sm:$0xff]  ;;  %v216_v32 = vld [vmem:[%s988_s4 + $0x1f0] sm:$0xff] }
  0x1e   :  { %548 = vmatprep.subr.bf16.mxu0 %v547_v25  ;;  %v519_v33 = vpack.c.bf16 %v218_v31, %v215_v30  ;;  %v219_v34 = vld [vmem:[%s988_s4 + $0x208] sm:$0xff]  ;;  %v214_v35 = vld [vmem:[%s988_s4 + $0x1e0] sm:$0xff]  ;;  %v217_v37 = vld [vmem:[%s988_s4 + $0x1f8] sm:$0xff] }
  0x1f   :  { %502 = vmatpush1.bf16.msra.mxu1 %v501_v1  ;;  %550 = vmatpush3.bf16.msra.mxu0 %v549_v29  ;;  %v551_v36 = vpack.c.bf16 %v219_v34, %v216_v32  ;;  %v168_v38 = vld [vmem:[%s988_s4 + $0x70] sm:$0xff]  ;;  %v171_v39 = vld [vmem:[%s988_s4 + $0x88] sm:$0xff]  ;;  %v521_v40 = vpack.c.bf16 %v217_v37, %v214_v35  ;;  %v221_v42 = vld [vmem:[%s988_s4 + $0x218] sm:$0xff] }
  0x20   :  { %504 = vmatprep.subr.bf16.mxu1 %v503_v2  ;;  %v553_v41 = vpack.c.bf16 %v171_v39, %v168_v38  ;;  %v224_v43 = vld [vmem:[%s988_s4 + $0x230] sm:$0xff]  ;;  %v222_v44 = vld [vmem:[%s988_s4 + $0x220] sm:$0xff]  ;;  %v225_v46 = vld [vmem:[%s988_s4 + $0x238] sm:$0xff]  ;;  %v120_v38 = vlaneseq }
  0x21   :  { %552 = vmatprep.subr.bf16.mxu0 %v551_v36  ;;  %v523_v45 = vpack.c.bf16 %v224_v43, %v221_v42  ;;  %v220_v47 = vld [vmem:[%s988_s4 + $0x210] sm:$0xff]  ;;  %v223_v48 = vld [vmem:[%s988_s4 + $0x228] sm:$0xff]  ;;  %v555_v49 = vpack.c.bf16 %v225_v46, %v222_v44  ;;  %v174_v51 = vld [vmem:[%s988_s4 + $0xa0] sm:$0xff] }
  0x22   :  { %v525_v50 = vpack.c.bf16 %v223_v48, %v220_v47  ;;  %v177_v52 = vld [vmem:[%s988_s4 + $0xb8] sm:$0xff]  ;;  %v227_v54 = vld [vmem:[%s988_s4 + $0x248] sm:$0xff]  ;;  %v230_v55 = vld [vmem:[%s988_s4 + $0x260] sm:$0xff]  ;;  %v121_v39 = vshrl.u32 %v120_v38, 7 }
  0x23   :  { %506 = vmatpush1.bf16.msra.mxu1 %v505_v7  ;;  %554 = vmatpush3.bf16.msra.mxu0 %v553_v41  ;;  %v557_v53 = vpack.c.bf16 %v177_v52, %v174_v51  ;;  %v228_v56 = vld [vmem:[%s988_s4 + $0x250] sm:$0xff]  ;;  %v527_v57 = vpack.c.bf16 %v230_v55, %v227_v54  ;;  %v231_v58 = vld [vmem:[%s988_s4 + $0x268] sm:$0xff]  ;;  %v226_v59 = vld [vmem:[%s988_s4 + $0x240] sm:$0xff] }
  0x24   :  { %508 = vmatprep.subr.bf16.mxu1 %v507_v8  ;;  %556 = vmatprep.subr.bf16.mxu0 %v555_v49  ;;  %v229_v60 = vld [vmem:[%s988_s4 + $0x258] sm:$0xff]  ;;  %v559_v61 = vpack.c.bf16 %v231_v58, %v228_v56  ;;  %v180_v63 = vld [vmem:[%s988_s4 + $0xd0] sm:$0xff]  ;;  %v183_v0 = vld [vmem:[%s988_s4 + $0xe8] sm:$0xff]  ;;  %v126_v42 = vsub.s32 1, %v121_v39 }
  0x25   :  { %v529_v62 = vpack.c.bf16 %v229_v60, %v226_v59  ;;  %v561_v1 = vpack.c.bf16 %v183_v0, %v180_v63  ;;  %v233_v2 = vld [vmem:[%s988_s4 + $0x278] sm:$0xff]  ;;  %v236_v3 = vld [vmem:[%s988_s4 + $0x290] sm:$0xff]  ;;  %v234_v4 = vld [vmem:[%s988_s4 + $0x280] sm:$0xff] }
  0x26   :  { %v531_v5 = vpack.c.bf16 %v236_v3, %v233_v2  ;;  %v237_v6 = vld [vmem:[%s988_s4 + $0x298] sm:$0xff]  ;;  %v232_v7 = vld [vmem:[%s988_s4 + $0x270] sm:$0xff]  ;;  %v235_v8 = vld [vmem:[%s988_s4 + $0x288] sm:$0xff]  ;;  %v607_v3 = vmov 1983009808  }
  0x27   :  { %510 = vmatpush1.bf16.msra.mxu1 %v509_v13  ;;  %558 = vmatpush3.bf16.msra.mxu0 %v557_v53  ;;  %v563_v9 = vpack.c.bf16 %v237_v6, %v234_v4  ;;  %v533_v10 = vpack.c.bf16 %v235_v8, %v232_v7  ;;  %v186_v11 = vld [vmem:[%s988_s4 + $0x100] sm:$0xff]  ;;  %v189_v12 = vld [vmem:[%s988_s4 + $0x118] sm:$0xff]  ;;  %v240_v16 = vld [vmem:[%s988_s4 + $0x2b0] sm:$0xff]  ;;  %v396_v4 = vunpack.c.l.s4 %v607_v3 }
  0x28   :  { %512 = vmatprep.subr.bf16.mxu1 %v511_v14  ;;  %560 = vmatprep.subr.bf16.mxu0 %v559_v61  ;;  %v565_v13 = vpack.c.bf16 %v189_v12, %v186_v11  ;;  %v239_v14 = vld [vmem:[%s988_s4 + $0x2a8] sm:$0xff]  ;;  %v242_v15 = vld [vmem:[%s988_s4 + $0x2c0] sm:$0xff]  ;;  %v241_v20 = vld [vmem:[%s988_s4 + $0x2b8] sm:$0xff] }
  0x29   :  { %v243_v18 = vld [vmem:[%s988_s4 + $0x2c8] sm:$0xff]  ;;  %v238_v19 = vld [vmem:[%s988_s4 + $0x2a0] sm:$0xff]  ;;  %v192_v23 = vld [vmem:[%s988_s4 + $0x130] sm:$0xff] }
  0x2a   :  { %v537_v22 = vpack.c.bf16 %v241_v20, %v238_v19  ;;  %v195_v24 = vld [vmem:[%s988_s4 + $0x148] sm:$0xff]  ;;  %v245_v25 = vld [vmem:[%s988_s4 + $0x2d8] sm:$0xff]  ;;  %v248_v27 = vld [vmem:[%s988_s4 + $0x2f0] sm:$0xff] }
  0x2b   :  { %514 = vmatpush1.bf16.msra.mxu1 %v513_v17  ;;  %562 = vmatpush3.bf16.msra.mxu0 %v561_v1  ;;  %v535_v17 = vpack.c.bf16 %v242_v15, %v239_v14  ;;  %v246_v28 = vld [vmem:[%s988_s4 + $0x2e0] sm:$0xff]  ;;  %v249_v29 = vld [vmem:[%s988_s4 + $0x2f8] sm:$0xff]  ;;  %v539_v30 = vpack.c.bf16 %v248_v27, %v245_v25  ;;  %v244_v32 = vld [vmem:[%s988_s4 + $0x2d0] sm:$0xff] }
  0x2c   :  { %516 = vmatprep.subr.bf16.mxu1 %v515_v21  ;;  %564 = vmatprep.subr.bf16.mxu0 %v563_v9  ;;  %v567_v21 = vpack.c.bf16 %v243_v18, %v240_v16  ;;  %v571_v31 = vpack.c.bf16 %v249_v29, %v246_v28  ;;  %v198_v34 = vld [vmem:[%s988_s4 + $0x160] sm:$0xff]  ;;  %v201_v35 = vld [vmem:[%s988_s4 + $0x178] sm:$0xff]  ;;  %vm413_vm4 = vmor %vm412_vm3, %vm411_vm2 }
  0x2d   :  { %v573_v37 = vpack.c.bf16 %v201_v35, %v198_v34  ;;  %v118_v41 = vld [vmem:[%s987_s3] sm:$0x3]  ;;  %vm415_vm6 = vmor %vm414_vm5, %vm413_vm4 }
  0x2e   :  { %v127_v49 = vrot.slane %v118_v41, %v126_v42  ;;  %v136_v52 = vld [vmem:[%s986_s2] sm:$0x3]  ;;  %s608_s2 = smov [#allocation2]  }
  0x2f   :  { %518 = vmatpush1.bf16.msra.mxu1 %v517_v26  ;;  %566 = vmatpush3.bf16.msra.mxu0 %v565_v13  ;;  %v569_v26 = vpack.c.bf16 %v195_v24, %v192_v23  ;;  %v145_v58 = vrot.slane %v136_v52, %v126_v42  ;;  %s423_s3 = sshll.u32 %s608_s2, 4  ;;  %s424_s3 = int_to_ptr.vmem [resolvable:$true] %s423_s3 }
  0x30   :  { %520 = vmatprep.subr.bf16.mxu1 %v519_v33  ;;  %568 = vmatprep.subr.bf16.mxu0 %v567_v21  ;;  %v247_v33 = vld [vmem:[%s988_s4 + $0x2e8] sm:$0xff]  ;;  %s582_s24 = scalar_lea.vmem %s424_s3, 96  ;;  %p587_p1 = scmp.lt.s32.totalorder %s424_s3, %s424_s3 }
  0x31   :  { %v541_v36 = vpack.c.bf16 %v247_v33, %v244_v32  ;;  %p583_p0 = scmp.ne.s32.totalorder %s424_s3, %s582_s24  ;;  %p588_p2 = scmp.lt.s32.totalorder %s582_s24, %s582_s24 }
  0x33   :  { %522 = vmatpush1.bf16.msra.mxu1 %v521_v40  ;;  %570 = vmatpush3.bf16.msra.mxu0 %v569_v26  ;;  %v122_v40 = vsub.s32 0, %v121_v39  ;;  %p589_p3 = por %p588_p2, %p587_p1 }
  0x34   :  { %524 = vmatprep.subr.bf16.mxu1 %v523_v45  ;;  %572 = vmatprep.subr.bf16.mxu0 %v571_v31 }
  0x35   :  { %v123_v47 = vrot.slane %v118_v41, %v122_v40  ;;  %v141_v56 = vrot.slane %v136_v52, %v122_v40  ;;  %p590_p4 = pnand %p589_p3, %p583_p0 }
  0x37   :  { %526 = vmatpush1.bf16.msra.mxu1 %v525_v50  ;;  %574 = vmatpush3.bf16.msra.mxu0 %v573_v37 }
  0x38   :  { %528 = vmatprep.subr.bf16.mxu1 %v527_v57 }
  0x3b   :  { %530 = vmatpush1.bf16.msra.mxu1 %v529_v62 }
  0x3c   :  { %532 = vmatprep.subr.bf16.mxu1 %v531_v5  ;;  %v397_v5 = vunpack.c.0.s8 %v396_v4 }
  0x3e   :  { %v400_v8 = vsub.s32 %v397_v5, %v121_v39 }
  0x3f   :  { %534 = vmatpush1.bf16.msra.mxu1 %v533_v10 }
  0x40   :  { %536 = vmatprep.subr.bf16.mxu1 %v535_v17 }
  0x43   :  { %538 = vmatpush1.bf16.msra.mxu1 %v537_v22 }
  0x44   :  { %540 = vmatprep.subr.bf16.mxu1 %v539_v30 }
  0x47   :  { %542 = vmatpush1.bf16.msra.mxu1 %v541_v36 }
  0x97   :  { %v113_v44 = vpop.xlane.xlu0 %112 }
  0xe3   :  { %v104_v43 = vpop.f32.mrb[0].mxu0 }
  0xe4   :  { %v114_v45 = vmul.f32 2.0, %v104_v43  ;;  %v106_v46 = vpop.f32.mrb[1].mxu0 }
  0xe5   :  { %v115_v48 = vmul.f32 2.0, %v106_v46 }
  0xe6   :  { %v116_v50 = vsub.f32 %v113_v44, %v114_v45 }
  0xe7   :  { %v117_v51 = vsub.f32 %v113_v44, %v115_v48 }
  0xe8   :  { %v130_v53 = vadd.f32 %v123_v47, %v116_v50 }
  0xe9   :  { %v131_v54 = vadd.f32 %v127_v49, %v117_v51 }
  0xea   :  { %v132_v55 = vmax.f32 %v130_v53, 0.0 }
  0xeb   :  { %v133_v57 = vmax.f32 %v131_v54, 0.0 }
  0xec   :  { %v134_v59 = vsub.f32 0.0, %v132_v55 }
  0xed   :  { %v135_v60 = vsub.f32 0.0, %v133_v57 }
  0xee   :  { %v148_v61 = vmul.f32 %v141_v56, %v134_v59 }
  0xef   :  { %v149_v62 = vmul.f32 %v145_v58, %v135_v60 }
  0xf0   :  { %v150_v63 = vmul.f32 1.442695, %v148_v61 }
  0xf1   :  { %v152_v0 = vmul.f32 1.442695, %v149_v62 }
  0xf3   :  { %578 = vpow2.f32 %v152_v0 }
  0xf4   :  { %580 = vpow2.f32 %v150_v63 }
  0xfd   :  { %v579_v1 = vpop.eup %578 }
  0xfe   :  { %v581_v2 = vpop.eup %580  ;;  %314 = vmatprep.mubr.f32.mxu1 %v579_v1  ;;  %385 = vmatprep.mubr.f32.mxu0 %v579_v1 }
  0xff   :  { %315 = vmatmul.mubr.f32.vlgmr.msra.gmra.mrb[0].mxu1 %v581_v2  ;;  %386 = vmatmul.mubr.f32.vlgmr.msra.gmra.mrb[2].mxu0 %v581_v2 }
 0x1d2   :  { %v316_v6 = vpop.f32.mrb[0].mxu1  ;;  %v464_v7 = vpop.f32.mrb[2].mxu0 }
 0x1d3   :  { %v318_v9 = vpop.f32.mrb[1].mxu1  ;;  %v465_v10 = vpop.f32.mrb[3].mxu0 }
 0x1d4   :  { %v394_v11 = vcombine.low %v316_v6, %v318_v9  ;;  %v466_v12 = vadd.f32 %v465_v10, %v464_v7 }
 0x1d6   :  { %v401_v13 = vrot.slane %v394_v11, %v400_v8  ;;  %v408_v14 = vrot.slane %v466_v12, %v400_v8 }
 0x1d8   :  { %v409_v15 = vcombine.low %v401_v13, %v408_v14 }
 0x1da   :  { %416 = vst.msk [vmem:[#allocation2] sm:$0x3f] %vm415_vm6, %v409_v15 }
 0x1db   :  { %593 = shalt.err (!%p590_p4)
}
 0x1dc   :  { %s594_s26 = scalar_lea.hbm %s989_s5, 96 }
 0x1dd   :  { %p595_p5 = scmp.ne.s32.totalorder %s989_s5, %s594_s26  ;;  %p598_p6 = scmp.lt.u32.totalorder %s594_s26, %s989_s5 }
 0x1df   :  { %p600_p7 = pnand %p598_p6, %p595_p5 }
 0x1e1   :  { %603 = shalt.err (!%p600_p7)
}
 0x1e2   :  { %426 = dma.vmem_to_hbm [thread:$0]  %s424_s3, 96, %s989_s5, [#allocation3]  }
 0x1e3   :  { %604 = dma.done.wait [#allocation3], 96  }
 0x1e4   :  { %605 = vsyncadd [#allocation3], 4294967200 }
 0x1e5   :  { %430 = vsyncpa [#allocation3], 1 }

</bundles_post_ra>
